<compile_context>
chip_gen: v5e
topology: v5e:2x2
jax: 0.10.0
libtpu: 0.0.40
codegen_flags: <defaults>
</compile_context>

<pallas_src>
import numpy as np
import jax
import jax.numpy as jnp
from jax.experimental import pallas as pl
from jax.experimental.pallas import tpu as pltpu


LANE = 128          # lane width: pad every feature dimension to a multiple of this
TB = 256            # batch tile (multiple of 256 -> MXU-shaped M on v6e/v7x, ok on v5e)


def round_up(x, m):
    return ((x + m - 1) // m) * m


# ----------------------------------------------------------------------------
# Architecture derivation — identical numpy logic to AutoEncoderModule.__init__
# ----------------------------------------------------------------------------
def build_layer_dims(n_features, sequence_length, hidden_size):
    input_length = n_features * sequence_length
    dec_steps = 2 ** np.arange(
        max(np.ceil(np.log2(hidden_size)), 2), np.log2(input_length)
    )[1:]
    dec_setup = np.concatenate([[hidden_size], dec_steps.repeat(2), [input_length]])
    enc_setup = dec_setup[::-1]
    enc_pairs = [(int(a), int(b)) for a, b in enc_setup.reshape(-1, 2)]
    dec_pairs = [(int(a), int(b)) for a, b in dec_setup.reshape(-1, 2)]
    return enc_pairs, dec_pairs


# ----------------------------------------------------------------------------
# Deterministic parameter init (PyTorch Linear default: U(-1/sqrt(in), 1/sqrt(in)))
# Weights are stored pre-transposed as (in, out) so the kernel does x @ W.
# ----------------------------------------------------------------------------
def init_params(key, layer_pairs):
    params = []
    for (fan_in, fan_out) in layer_pairs:
        key, kw, kb = jax.random.split(key, 3)
        bound = 1.0 / np.sqrt(fan_in)
        w = jax.random.uniform(kw, (fan_in, fan_out), jnp.float32, -bound, bound)
        b = jax.random.uniform(kb, (1, fan_out), jnp.float32, -bound, bound)
        params.append((w, b))
    return params, key


# ----------------------------------------------------------------------------
# One-time (outside the kernel / outside the forward) param preparation:
# zero-pad every Linear to lane-aligned shapes and pre-cast weights to bf16.
# ----------------------------------------------------------------------------
def prepare_padded_params(params, lane=LANE):
    padded = []
    for (w, b) in params:
        in_pad = round_up(w.shape[0], lane)
        out_pad = round_up(w.shape[1], lane)
        w_pad = jnp.zeros((in_pad, out_pad), jnp.float32)
        w_pad = w_pad.at[: w.shape[0], : w.shape[1]].set(w)
        b_pad = jnp.zeros((1, out_pad), jnp.float32)
        b_pad = b_pad.at[:, : b.shape[1]].set(b)
        padded.append((w_pad.astype(jnp.bfloat16), b_pad))
    return padded


# ----------------------------------------------------------------------------
# Pallas kernel: full encoder + decoder MLP on one (TB, 128) batch tile.
#   refs = (x, w0, b0, w1, b1, ..., enc_out, dec_out)
# Tanh follows every Linear except the last encoder layer and the last decoder
# layer (matches nn.Sequential(...)[:-1] construction in the PyTorch module).
# Matmuls run bf16 x bf16 -> f32 (MXU-native); bias add & tanh stay in f32.
# ----------------------------------------------------------------------------
def make_ae_kernel(n_enc_layers, n_dec_layers):
    n_layers = n_enc_layers + n_dec_layers

    def kernel(*refs):
        x_ref = refs[0]
        enc_ref = refs[1 + 2 * n_layers]
        dec_ref = refs[2 + 2 * n_layers]

        h = x_ref[...]  # (TB, D_pad) f32, already the right dtype (no cast)
        idx = 1
        for li in range(n_layers):
            w_ref = refs[idx]
            b_ref = refs[idx + 1]
            idx += 2
            h = jnp.dot(
                h.astype(jnp.bfloat16),
                w_ref[...],                       # pre-cast bf16 weights
                preferred_element_type=jnp.float32,
            ) + b_ref[...]                        # f32 bias
            is_last_enc = (li == n_enc_layers - 1)
            is_last_dec = (li == n_layers - 1)
            if not (is_last_enc or is_last_dec):
                h = jnp.tanh(h)                   # f32, EUP
            if is_last_enc:
                enc_ref[...] = h                  # lane-dense (TB, 128) store
        dec_ref[...] = h                          # lane-dense (TB, 128) store

    return kernel


# ----------------------------------------------------------------------------
# Wrapper: flatten + pad, call pallas_call with batch tiling, slice + reshape.
# ----------------------------------------------------------------------------
def autoencoder_forward(ts_batch, padded_params, n_enc_layers, n_dec_layers,
                        hidden_size, return_latent=False, tb=TB):
    B = ts_batch.shape[0]
    x = ts_batch.reshape(B, -1).astype(jnp.float32)
    D_true = x.shape[1]

    D_pad = padded_params[0][0].shape[0]                  # padded input width
    H_pad = padded_params[n_enc_layers - 1][0].shape[1]   # padded latent width
    n_layers = n_enc_layers + n_dec_layers

    # Pad batch to a multiple of the tile; padded rows are zeros and are
    # sliced away afterwards (they flow through the net harmlessly).
    B_pad = round_up(B, tb)
    x_pad = jnp.zeros((B_pad, D_pad), jnp.float32).at[:B, :D_true].set(x)

    flat_params = []
    for (w, b) in padded_params:
        flat_params.append(w)
        flat_params.append(b)

    kernel = make_ae_kernel(n_enc_layers, n_dec_layers)

    grid = (B_pad // tb,)

    # x and outputs are batch-tiled; weights/biases use a constant block index
    # so they are fetched once and stay VMEM-resident across grid steps.
    in_specs = [pl.BlockSpec((tb, D_pad), lambda i: (i, 0))]
    for (w, b) in padded_params:
        in_specs.append(pl.BlockSpec(w.shape, lambda i: (0, 0)))
        in_specs.append(pl.BlockSpec(b.shape, lambda i: (0, 0)))

    out_shapes = (
        jax.ShapeDtypeStruct((B_pad, H_pad), jnp.float32),
        jax.ShapeDtypeStruct((B_pad, D_pad), jnp.float32),
    )
    out_specs = (
        pl.BlockSpec((tb, H_pad), lambda i: (i, 0)),
        pl.BlockSpec((tb, D_pad), lambda i: (i, 0)),
    )

    # Advisory cost estimate for XLA's scheduler.
    flops = 2 * B_pad * sum(int(w.shape[0]) * int(w.shape[1])
                            for (w, _) in padded_params)
    transcendentals = B_pad * sum(
        int(padded_params[li][0].shape[1])
        for li in range(n_layers)
        if li not in (n_enc_layers - 1, n_layers - 1)
    )
    bytes_accessed = (
        x_pad.size * 4
        + sum(w.size * 2 + b.size * 4 for (w, b) in padded_params)
        + B_pad * (H_pad + D_pad) * 4
    )

    enc_pad, dec_pad = pl.pallas_call(
        kernel,
        grid=grid,
        in_specs=in_specs,
        out_specs=out_specs,
        out_shape=out_shapes,
        compiler_params=pltpu.CompilerParams(
            dimension_semantics=("parallel",),        # shard batch tiles across TCs
            vmem_limit_bytes=32 * 1024 * 1024,        # safe on v5e/v6e/v7x
        ),
        cost_estimate=pl.CostEstimate(
            flops=int(flops),
            transcendentals=int(transcendentals),
            bytes_accessed=int(bytes_accessed),
        ),
    )(x_pad, *flat_params)

    enc = enc_pad[:B, :hidden_size]
    dec = dec_pad[:B, :D_true]
    reconstructed = dec.reshape(ts_batch.shape)
    return (reconstructed, enc) if return_latent else reconstructed


# ----------------------------------------------------------------------------
# Pure-JAX reference mirroring the kernel math (bf16 matmul inputs, f32 accum).
# ----------------------------------------------------------------------------
def reference_forward(ts_batch, padded_params, n_enc_layers, hidden_size):
    B = ts_batch.shape[0]
    x = ts_batch.reshape(B, -1).astype(jnp.float32)
    D_true = x.shape[1]
    D_pad = padded_params[0][0].shape[0]
    h = jnp.zeros((B, D_pad), jnp.float32).at[:, :D_true].set(x)

    n_layers = len(padded_params)
    enc = None
    for li, (w, b) in enumerate(padded_params):
        h = jnp.dot(h.astype(jnp.bfloat16), w,
                    preferred_element_type=jnp.float32) + b
        if li == n_enc_layers - 1:
            enc = h[:, :hidden_size]          # no tanh after last encoder layer
        elif li != n_layers - 1:
            h = jnp.tanh(h)
    dec = h[:, :D_true].reshape(ts_batch.shape)
    return dec, enc


if __name__ == "__main__":
    # Small shapes consistent with the module: n_features * sequence_length = 32
    batch = 2
    n_features = 4
    sequence_length = 8
    hidden_size = 8

    enc_pairs, dec_pairs = build_layer_dims(n_features, sequence_length, hidden_size)
    layer_pairs = enc_pairs + dec_pairs  # encoder then decoder Linear layers

    key = jax.random.PRNGKey(0)
    params, key = init_params(key, layer_pairs)
    padded_params = prepare_padded_params(params)

    key, kx = jax.random.split(key)
    ts_batch = jax.random.normal(
        kx, (batch, sequence_length, n_features), jnp.float32
    )

    recon, enc = autoencoder_forward(
        ts_batch, padded_params, len(enc_pairs), len(dec_pairs), hidden_size,
        return_latent=True,
    )
    recon = jax.block_until_ready(recon)
    enc = jax.block_until_ready(enc)

    # Sanity-check against the pure-JAX reference (same bf16/f32 math).
    ref_dec, ref_enc = reference_forward(
        ts_batch, padded_params, len(enc_pairs), hidden_size
    )
    assert recon.shape == ts_batch.shape
    assert enc.shape == (batch, hidden_size)
    np.testing.assert_allclose(np.asarray(recon), np.asarray(ref_dec),
                               rtol=1e-3, atol=1e-3)
    np.testing.assert_allclose(np.asarray(enc), np.asarray(ref_enc),
                               rtol=1e-3, atol=1e-3)

    print("KERNEL_OK")
</pallas_src>

<mosaic_0001>
module attributes {stable_mosaic.version = 11 : i64} {
  func.func @kernel(%arg0: i32, %arg1: memref<256x128xf32, #tpu.memory_space<vmem>>, %arg2: memref<128x128xbf16, #tpu.memory_space<vmem>>, %arg3: memref<1x128xf32, #tpu.memory_space<vmem>>, %arg4: memref<128x128xbf16, #tpu.memory_space<vmem>>, %arg5: memref<1x128xf32, #tpu.memory_space<vmem>>, %arg6: memref<128x128xbf16, #tpu.memory_space<vmem>>, %arg7: memref<1x128xf32, #tpu.memory_space<vmem>>, %arg8: memref<128x128xbf16, #tpu.memory_space<vmem>>, %arg9: memref<1x128xf32, #tpu.memory_space<vmem>>, %arg10: memref<256x128xf32, #tpu.memory_space<vmem>>, %arg11: memref<256x128xf32, #tpu.memory_space<vmem>>) attributes {dimension_semantics = [#tpu.dimension_semantics<parallel>], iteration_bounds = array<i64: 1>, scalar_prefetch = 0 : i64, scratch_operands = 0 : i64, tpu.core_type = #tpu.core_type<tc>, window_params = [{transform_indices = @transform_0, window_bounds = array<i64: 256, 128>}, {pipeline_mode = #tpu.pipeline_mode<synchronous>, transform_indices = @transform_1, window_bounds = array<i64: 128, 128>}, {pipeline_mode = #tpu.pipeline_mode<synchronous>, transform_indices = @transform_2, window_bounds = array<i64: 1, 128>}, {pipeline_mode = #tpu.pipeline_mode<synchronous>, transform_indices = @transform_3, window_bounds = array<i64: 128, 128>}, {pipeline_mode = #tpu.pipeline_mode<synchronous>, transform_indices = @transform_4, window_bounds = array<i64: 1, 128>}, {pipeline_mode = #tpu.pipeline_mode<synchronous>, transform_indices = @transform_5, window_bounds = array<i64: 128, 128>}, {pipeline_mode = #tpu.pipeline_mode<synchronous>, transform_indices = @transform_6, window_bounds = array<i64: 1, 128>}, {pipeline_mode = #tpu.pipeline_mode<synchronous>, transform_indices = @transform_7, window_bounds = array<i64: 128, 128>}, {pipeline_mode = #tpu.pipeline_mode<synchronous>, transform_indices = @transform_8, window_bounds = array<i64: 1, 128>}, {transform_indices = @transform_9, window_bounds = array<i64: 256, 128>}, {transform_indices = @transform_10, window_bounds = array<i64: 256, 128>}]} {
    %c0 = arith.constant 0 : index
    %c0_0 = arith.constant 0 : index
    %0 = vector.load %arg1[%c0, %c0_0] : memref<256x128xf32, #tpu.memory_space<vmem>>, vector<256x128xf32>
    %1 = arith.truncf %0 : vector<256x128xf32> to vector<256x128xbf16>
    %c0_1 = arith.constant 0 : index
    %c0_2 = arith.constant 0 : index
    %2 = vector.load %arg2[%c0_1, %c0_2] : memref<128x128xbf16, #tpu.memory_space<vmem>>, vector<128x128xbf16>
    %cst = arith.constant dense<0.000000e+00> : vector<256x128xf32>
    %3 = tpu.matmul %1, %2, %cst {dimension_numbers = #tpu.dot_dimension_numbers<[1], [0], [0], [1], [0, 0, 1, 1], [], []>} : vector<256x128xbf16>, vector<128x128xbf16>, vector<256x128xf32> -> vector<256x128xf32>
    %c0_3 = arith.constant 0 : index
    %c0_4 = arith.constant 0 : index
    %4 = vector.load %arg3[%c0_3, %c0_4] : memref<1x128xf32, #tpu.memory_space<vmem>>, vector<1x128xf32>
    %5 = vector.broadcast %4 : vector<1x128xf32> to vector<256x128xf32>
    %6 = arith.addf %3, %5 : vector<256x128xf32>
    %7 = math.tanh %6 : vector<256x128xf32>
    %8 = arith.truncf %7 : vector<256x128xf32> to vector<256x128xbf16>
    %c0_5 = arith.constant 0 : index
    %c0_6 = arith.constant 0 : index
    %9 = vector.load %arg4[%c0_5, %c0_6] : memref<128x128xbf16, #tpu.memory_space<vmem>>, vector<128x128xbf16>
    %cst_7 = arith.constant dense<0.000000e+00> : vector<256x128xf32>
    %10 = tpu.matmul %8, %9, %cst_7 {dimension_numbers = #tpu.dot_dimension_numbers<[1], [0], [0], [1], [0, 0, 1, 1], [], []>} : vector<256x128xbf16>, vector<128x128xbf16>, vector<256x128xf32> -> vector<256x128xf32>
    %c0_8 = arith.constant 0 : index
    %c0_9 = arith.constant 0 : index
    %11 = vector.load %arg5[%c0_8, %c0_9] : memref<1x128xf32, #tpu.memory_space<vmem>>, vector<1x128xf32>
    %12 = vector.broadcast %11 : vector<1x128xf32> to vector<256x128xf32>
    %13 = arith.addf %10, %12 : vector<256x128xf32>
    %c0_10 = arith.constant 0 : index
    %c0_11 = arith.constant 0 : index
    %14 = vector.load %arg10[%c0_10, %c0_11] : memref<256x128xf32, #tpu.memory_space<vmem>>, vector<256x128xf32>
    tpu.vector_store %arg10[%c0_10, %c0_11], %13 {strides = array<i32>} : memref<256x128xf32, #tpu.memory_space<vmem>>, vector<256x128xf32>,
    %15 = arith.truncf %13 : vector<256x128xf32> to vector<256x128xbf16>
    %c0_12 = arith.constant 0 : index
    %c0_13 = arith.constant 0 : index
    %16 = vector.load %arg6[%c0_12, %c0_13] : memref<128x128xbf16, #tpu.memory_space<vmem>>, vector<128x128xbf16>
    %cst_14 = arith.constant dense<0.000000e+00> : vector<256x128xf32>
    %17 = tpu.matmul %15, %16, %cst_14 {dimension_numbers = #tpu.dot_dimension_numbers<[1], [0], [0], [1], [0, 0, 1, 1], [], []>} : vector<256x128xbf16>, vector<128x128xbf16>, vector<256x128xf32> -> vector<256x128xf32>
    %c0_15 = arith.constant 0 : index
    %c0_16 = arith.constant 0 : index
    %18 = vector.load %arg7[%c0_15, %c0_16] : memref<1x128xf32, #tpu.memory_space<vmem>>, vector<1x128xf32>
    %19 = vector.broadcast %18 : vector<1x128xf32> to vector<256x128xf32>
    %20 = arith.addf %17, %19 : vector<256x128xf32>
    %21 = math.tanh %20 : vector<256x128xf32>
    %22 = arith.truncf %21 : vector<256x128xf32> to vector<256x128xbf16>
    %c0_17 = arith.constant 0 : index
    %c0_18 = arith.constant 0 : index
    %23 = vector.load %arg8[%c0_17, %c0_18] : memref<128x128xbf16, #tpu.memory_space<vmem>>, vector<128x128xbf16>
    %cst_19 = arith.constant dense<0.000000e+00> : vector<256x128xf32>
    %24 = tpu.matmul %22, %23, %cst_19 {dimension_numbers = #tpu.dot_dimension_numbers<[1], [0], [0], [1], [0, 0, 1, 1], [], []>} : vector<256x128xbf16>, vector<128x128xbf16>, vector<256x128xf32> -> vector<256x128xf32>
    %c0_20 = arith.constant 0 : index
    %c0_21 = arith.constant 0 : index
    %25 = vector.load %arg9[%c0_20, %c0_21] : memref<1x128xf32, #tpu.memory_space<vmem>>, vector<1x128xf32>
    %26 = vector.broadcast %25 : vector<1x128xf32> to vector<256x128xf32>
    %27 = arith.addf %24, %26 : vector<256x128xf32>
    %c0_22 = arith.constant 0 : index
    %c0_23 = arith.constant 0 : index
    %28 = vector.load %arg11[%c0_22, %c0_23] : memref<256x128xf32, #tpu.memory_space<vmem>>, vector<256x128xf32>
    tpu.vector_store %arg11[%c0_22, %c0_23], %27 {strides = array<i32>} : memref<256x128xf32, #tpu.memory_space<vmem>>, vector<256x128xf32>,
    return
  }
  func.func @transform_0(%arg0: i32) -> (i32, i32) {
    %c0_i32 = arith.constant 0 : i32
    %c0_i32_0 = arith.constant 0 : i32
    return %arg0, %c0_i32 : i32, i32
  }
  func.func @transform_1(%arg0: i32) -> (i32, i32) {
    %c0_i32 = arith.constant 0 : i32
    %c0_i32_0 = arith.constant 0 : i32
    %c0_i32_1 = arith.constant 0 : i32
    return %c0_i32, %c0_i32_0 : i32, i32
  }
  func.func @transform_2(%arg0: i32) -> (i32, i32) {
    %c0_i32 = arith.constant 0 : i32
    %c0_i32_0 = arith.constant 0 : i32
    %c0_i32_1 = arith.constant 0 : i32
    return %c0_i32, %c0_i32_0 : i32, i32
  }
  func.func @transform_3(%arg0: i32) -> (i32, i32) {
    %c0_i32 = arith.constant 0 : i32
    %c0_i32_0 = arith.constant 0 : i32
    %c0_i32_1 = arith.constant 0 : i32
    return %c0_i32, %c0_i32_0 : i32, i32
  }
  func.func @transform_4(%arg0: i32) -> (i32, i32) {
    %c0_i32 = arith.constant 0 : i32
    %c0_i32_0 = arith.constant 0 : i32
    %c0_i32_1 = arith.constant 0 : i32
    return %c0_i32, %c0_i32_0 : i32, i32
  }
  func.func @transform_5(%arg0: i32) -> (i32, i32) {
    %c0_i32 = arith.constant 0 : i32
    %c0_i32_0 = arith.constant 0 : i32
    %c0_i32_1 = arith.constant 0 : i32
    return %c0_i32, %c0_i32_0 : i32, i32
  }
  func.func @transform_6(%arg0: i32) -> (i32, i32) {
    %c0_i32 = arith.constant 0 : i32
    %c0_i32_0 = arith.constant 0 : i32
    %c0_i32_1 = arith.constant 0 : i32
    return %c0_i32, %c0_i32_0 : i32, i32
  }
  func.func @transform_7(%arg0: i32) -> (i32, i32) {
    %c0_i32 = arith.constant 0 : i32
    %c0_i32_0 = arith.constant 0 : i32
    %c0_i32_1 = arith.constant 0 : i32
    return %c0_i32, %c0_i32_0 : i32, i32
  }
  func.func @transform_8(%arg0: i32) -> (i32, i32) {
    %c0_i32 = arith.constant 0 : i32
    %c0_i32_0 = arith.constant 0 : i32
    %c0_i32_1 = arith.constant 0 : i32
    return %c0_i32, %c0_i32_0 : i32, i32
  }
  func.func @transform_9(%arg0: i32) -> (i32, i32) {
    %c0_i32 = arith.constant 0 : i32
    %c0_i32_0 = arith.constant 0 : i32
    return %arg0, %c0_i32 : i32, i32
  }
  func.func @transform_10(%arg0: i32) -> (i32, i32) {
    %c0_i32 = arith.constant 0 : i32
    %c0_i32_0 = arith.constant 0 : i32
    return %arg0, %c0_i32 : i32, i32
  }
}

</mosaic_0001>

<bundles_post_ra>
// kernel: tpu_custom_call.1
= control target key start
LH: loop header
LB: loop body
LE: loop exit
PB: predicated region body
PF: predicated region fallthrough
CT: control target
= control target key end

     0   :  { %16 = vsyncpa [#allocation3], 0  ;;  %s1742_s0 = inlined_call_operand.hbm [shape: f32[256,128], index: 0, kind: input, shape index: {}]   ;;  %s1743_s1 = inlined_call_operand.hbm [shape: bf16[128,128], index: 1, kind: input, shape index: {}]   ;;  %s1744_s2 = inlined_call_operand.vmem [shape: f32[1,128], index: 2, kind: input, shape index: {}]   ;;  %s1745_s3 = inlined_call_operand.hbm [shape: bf16[128,128], index: 3, kind: input, shape index: {}]   ;;  %s1746_s4 = inlined_call_operand.vmem [shape: f32[1,128], index: 4, kind: input, shape index: {}]   ;;  %s1747_s5 = inlined_call_operand.hbm [shape: bf16[128,128], index: 5, kind: input, shape index: {}]   ;;  %s1748_s6 = inlined_call_operand.vmem [shape: f32[1,128], index: 6, kind: input, shape index: {}]   ;;  %s1749_s7 = inlined_call_operand.hbm [shape: bf16[128,128], index: 7, kind: input, shape index: {}]   ;;  %s1750_s8 = inlined_call_operand.vmem [shape: f32[1,128], index: 8, kind: input, shape index: {}]   ;;  %s1751_s9 = inlined_call_operand.hbm [shape: f32[256,128], index: 9, kind: output, shape index: {0}]   ;;  %s1752_s10 = inlined_call_operand.hbm [shape: f32[256,128], index: 10, kind: output, shape index: {1}]  }
   0x1   :  { %17 = vsyncpa [#allocation6], 0 }
   0x2   :  { %18 = vsyncpa [#allocation9], 0 }
   0x3   :  { %19 = vsyncpa [#allocation4], 0  ;;  %s38_s15 = sshll.u32 %s1743_s1, 4  ;;  %s39_s15 = int_to_ptr.hbm [resolvable:$true] %s38_s15 }
   0x4   :  { %20 = vsyncpa [#allocation13], 0  ;;  %s1486_s16 = smov [#allocation5]   ;;  %s68_s20 = sshll.u32 %s1747_s5, 4  ;;  %s69_s20 = int_to_ptr.hbm [resolvable:$true] %s68_s20 }
   0x5   :  { %s40_s17 = sshll.u32 %s1486_s16, 4  ;;  %s1487_s21 = smov 64   ;;  %s41_s17 = int_to_ptr.vmem [resolvable:$true] %s40_s17 }
   0x6   :  { %s1488_s22 = smov 4   ;;  %s1489_s23 = smov [#allocation8]  }
   0x7   :  { %46 = dma.hbm_to_vmem [thread:$0]  %s39_s15, 1024, %s41_s17, [#allocation6], %s1487_s21, %s1487_s21, %s1488_s22  }
   0x8   :  { %s70_s24 = sshll.u32 %s1489_s23, 4  ;;  %s25_s26 = sshll.u32 %s1742_s0, 4  ;;  %s71_s24 = int_to_ptr.vmem [resolvable:$true] %s70_s24  ;;  %s26_s26 = int_to_ptr.hbm [resolvable:$true] %s25_s26 }
   0x9   :  { %76 = dma.hbm_to_vmem [thread:$0]  %s69_s20, 1024, %s71_s24, [#allocation9], %s1487_s21, %s1487_s21, %s1488_s22  }
   0xa   :  { %s1490_s5 = smov [#allocation2]   ;;  %s53_s30 = sshll.u32 %s1745_s3, 4  ;;  %s54_s30 = int_to_ptr.hbm [resolvable:$true] %s53_s30 }
   0xb   :  { %s27_s27 = sshll.u32 %s1490_s5, 4  ;;  %s1491_s11 = smov 128   ;;  %s28_s27 = int_to_ptr.vmem [resolvable:$true] %s27_s27 }
   0xc   :  { %s1492_s12 = smov 8   ;;  %s1493_s0 = smov [#allocation7]  }
   0xd   :  { %33 = dma.hbm_to_vmem [thread:$0]  %s26_s26, 4096, %s28_s27, [#allocation3], %s1491_s11, %s1491_s11, %s1492_s12  }
   0xe   :  { %s55_s13 = sshll.u32 %s1493_s0, 4  ;;  %s83_s16 = sshll.u32 %s1749_s7, 4  ;;  %s56_s13 = int_to_ptr.vmem [resolvable:$true] %s55_s13  ;;  %s84_s16 = int_to_ptr.hbm [resolvable:$true] %s83_s16 }
   0xf   :  { %61 = dma.hbm_to_vmem [thread:$0]  %s54_s30, 1024, %s56_s13, [#allocation6], %s1487_s21, %s1487_s21, %s1488_s22  }
  0x10   :  { %s1494_s3 = smov [#allocation10]  }
  0x11   :  { %s85_s17 = sshll.u32 %s1494_s3, 4  ;;  %s86_s17 = int_to_ptr.vmem [resolvable:$true] %s85_s17 }
  0x12   :  { %91 = dma.hbm_to_vmem [thread:$0]  %s84_s16, 1024, %s86_s17, [#allocation9], %s1487_s21, %s1487_s21, %s1488_s22  }
  0x13   :  { %1476 = dma.done.wait [#allocation3], 4096  }
  0x14   :  { %1477 = vsyncadd [#allocation3], 4294963200 }
  0x15   :  { %1478 = dma.done.wait [#allocation6], 2048  }
  0x16   :  { %1479 = vsyncadd [#allocation6], 4294965248 }
  0x17   :  { %1480 = dma.done.wait [#allocation9], 2048  }
  0x18   :  { %1481 = vsyncadd [#allocation9], 4294965248  ;;  %v1140_v0 = vld [vmem:[#allocation5 + $0x38] sm:$0xff]  ;;  %v1139_v1 = vld [vmem:[#allocation5 + $0x30] sm:$0xff]  ;;  %s972_s25 = sshll.u32 %s1751_s9, 4  ;;  %s1496_s9 = smov [#allocation12]   ;;  %s973_s25 = int_to_ptr.hbm [resolvable:$true] %s972_s25 }
  0x19   :  { %230 = vmatpush.bf16.msra.mxu0 %v1140_v0  ;;  %v1138_v2 = vld [vmem:[#allocation5 + $0x28] sm:$0xff]  ;;  %v1137_v3 = vld [vmem:[#allocation5 + $0x20] sm:$0xff]  ;;  %v1136_v4 = vld [vmem:[#allocation5 + $0x18] sm:$0xff]  ;;  %s983_s1 = sshll.u32 %s1496_s9, 4  ;;  %s985_s27 = sshll.u32 %s1752_s10, 4  ;;  %s984_s1 = int_to_ptr.vmem [resolvable:$true] %s983_s1  ;;  %s986_s27 = int_to_ptr.hbm [resolvable:$true] %s985_s27 }
  0x1a   :  { %v1135_v5 = vld [vmem:[#allocation5 + $0x10] sm:$0xff]  ;;  %v1134_v6 = vld [vmem:[#allocation5 + $0x8] sm:$0xff]  ;;  %v1133_v7 = vld [vmem:[#allocation5] sm:$0xff] }
  0x1b   :  { %v114_v8 = vld [vmem:[#allocation2] sm:$0xff]  ;;  %v115_v9 = vld [vmem:[#allocation2 + $0x8] sm:$0xff]  ;;  %v116_v11 = vld [vmem:[#allocation2 + $0x10] sm:$0xff] }
  0x1c   :  { %v146_v10 = vpack.c.bf16 %v115_v9, %v114_v8  ;;  %v117_v12 = vld [vmem:[#allocation2 + $0x18] sm:$0xff]  ;;  %v118_v14 = vld [vmem:[#allocation2 + $0x20] sm:$0xff]  ;;  %v119_v15 = vld [vmem:[#allocation2 + $0x28] sm:$0xff] }
  0x1d   :  { %231 = vmatpush.bf16.msra.mxu0 %v1139_v1  ;;  %v147_v13 = vpack.c.bf16 %v117_v12, %v116_v11  ;;  %v148_v16 = vpack.c.bf16 %v119_v15, %v118_v14  ;;  %v120_v17 = vld [vmem:[#allocation2 + $0x30] sm:$0xff]  ;;  %v121_v18 = vld [vmem:[#allocation2 + $0x38] sm:$0xff]  ;;  %v122_v20 = vld [vmem:[#allocation2 + $0x40] sm:$0xff] }
  0x1e   :  { %v149_v19 = vpack.c.bf16 %v121_v18, %v120_v17  ;;  %v123_v21 = vld [vmem:[#allocation2 + $0x48] sm:$0xff]  ;;  %v124_v23 = vld [vmem:[#allocation2 + $0x50] sm:$0xff]  ;;  %v125_v24 = vld [vmem:[#allocation2 + $0x58] sm:$0xff] }
  0x1f   :  { %v150_v22 = vpack.c.bf16 %v123_v21, %v122_v20  ;;  %v151_v25 = vpack.c.bf16 %v125_v24, %v124_v23  ;;  %v1148_v26 = vld [vmem:[#allocation7 + $0x38] sm:$0xff]  ;;  %v1147_v27 = vld [vmem:[#allocation7 + $0x30] sm:$0xff]  ;;  %v1146_v28 = vld [vmem:[#allocation7 + $0x28] sm:$0xff] }
  0x20   :  { %435 = vmatpush.bf16.msra.mxu1 %v1148_v26  ;;  %v126_v29 = vld [vmem:[#allocation2 + $0x60] sm:$0xff]  ;;  %v127_v30 = vld [vmem:[#allocation2 + $0x68] sm:$0xff]  ;;  %v1144_v33 = vld [vmem:[#allocation7 + $0x18] sm:$0xff] }
  0x21   :  { %232 = vmatpush.bf16.msra.mxu0 %v1138_v2  ;;  %v152_v31 = vpack.c.bf16 %v127_v30, %v126_v29  ;;  %v1145_v32 = vld [vmem:[#allocation7 + $0x20] sm:$0xff]  ;;  %v1143_v34 = vld [vmem:[#allocation7 + $0x10] sm:$0xff]  ;;  %v1142_v35 = vld [vmem:[#allocation7 + $0x8] sm:$0xff] }
  0x22   :  { %v128_v36 = vld [vmem:[#allocation2 + $0x70] sm:$0xff]  ;;  %v129_v37 = vld [vmem:[#allocation2 + $0x78] sm:$0xff]  ;;  %v1141_v39 = vld [vmem:[#allocation7] sm:$0xff] }
  0x23   :  { %v153_v38 = vpack.c.bf16 %v129_v37, %v128_v36  ;;  %v130_v40 = vld [vmem:[#allocation2 + $0x80] sm:$0xff]  ;;  %v131_v41 = vld [vmem:[#allocation2 + $0x88] sm:$0xff]  ;;  %v132_v48 = vld [vmem:[#allocation2 + $0x90] sm:$0xff] }
  0x24   :  { %436 = vmatpush.bf16.msra.mxu1 %v1147_v27  ;;  %v154_v42 = vpack.c.bf16 %v131_v41, %v130_v40  ;;  %v1585_v44 = vld [vmem:[%s1744_s2] ss:$0 sm:$0xff]  ;;  %v133_v49 = vld [vmem:[#allocation2 + $0x98] sm:$0xff]  ;;  %v135_v59 = vld [vmem:[#allocation2 + $0xa8] sm:$0xff] }
  0x25   :  { %233 = vmatpush.bf16.msra.mxu0 %v1137_v3  ;;  %v155_v50 = vpack.c.bf16 %v133_v49, %v132_v48  ;;  %v134_v58 = vld [vmem:[#allocation2 + $0xa0] sm:$0xff]  ;;  %v139_v15 = vld [vmem:[#allocation2 + $0xc8] sm:$0xff]  ;;  %v140_v24 = vld [vmem:[#allocation2 + $0xd0] sm:$0xff] }
  0x26   :  { %v156_v60 = vpack.c.bf16 %v135_v59, %v134_v58  ;;  %v138_v14 = vld [vmem:[#allocation2 + $0xc0] sm:$0xff]  ;;  %v143_v36 = vld [vmem:[#allocation2 + $0xe8] sm:$0xff]  ;;  %v1155_v41 = vld [vmem:[#allocation8 + $0x30] sm:$0xff] }
  0x27   :  { %v1153_v48 = vld [vmem:[#allocation8 + $0x20] sm:$0xff]  ;;  %v1152_v49 = vld [vmem:[#allocation8 + $0x18] sm:$0xff]  ;;  %v1150_v58 = vld [vmem:[#allocation8 + $0x8] sm:$0xff] }
  0x28   :  { %437 = vmatpush.bf16.msra.mxu1 %v1146_v28 }
  0x29   :  { %234 = vmatpush.bf16.msra.mxu0 %v1136_v4  ;;  %v136_v4 = vld [vmem:[#allocation2 + $0xb0] sm:$0xff] }
  0x2c   :  { %438 = vmatpush.bf16.msra.mxu1 %v1145_v32 }
  0x2d   :  { %235 = vmatpush.bf16.msra.mxu0 %v1135_v5  ;;  %v137_v5 = vld [vmem:[#allocation2 + $0xb8] sm:$0xff] }
  0x30   :  { %439 = vmatpush.bf16.msra.mxu1 %v1144_v33 }
  0x31   :  { %236 = vmatpush.bf16.msra.mxu0 %v1134_v6  ;;  %v157_v6 = vpack.c.bf16 %v137_v5, %v136_v4 }
  0x34   :  { %440 = vmatpush.bf16.msra.mxu1 %v1143_v34  ;;  %v1156_v34 = vld [vmem:[#allocation8 + $0x38] sm:$0xff] }
  0x35   :  { %237 = vmatpush.bf16.msra.mxu0 %v1133_v7  ;;  %640 = vmatpush.bf16.msra.mxu2 %v1156_v34 }
  0x38   :  { %238 = vmatmul.bf16.vlgmr.msra.gmra.mxu0 %v146_v10  ;;  %441 = vmatpush.bf16.msra.mxu1 %v1142_v35  ;;  %v142_v35 = vld [vmem:[#allocation2 + $0xe0] sm:$0xff] }
  0x39   :  { %v160_v37 = vpack.c.bf16 %v143_v36, %v142_v35  ;;  %641 = vmatpush.bf16.msra.mxu2 %v1155_v41 }
  0x3c   :  { %442 = vmatpush.bf16.msra.mxu1 %v1141_v39 }
  0x48   :  { %243 = vmatmul.bf16.gmra.mxu0 %v147_v13 }
  0x58   :  { %248 = vmatmul.bf16.gmra.mxu0 %v148_v16  ;;  %v158_v16 = vpack.c.bf16 %v139_v15, %v138_v14 }
  0x68   :  { %253 = vmatmul.bf16.gmra.mxu0 %v149_v19 }
  0x78   :  { %258 = vmatmul.bf16.gmra.mxu0 %v150_v22 }
  0x88   :  { %263 = vmatmul.bf16.gmra.mxu0 %v151_v25  ;;  %v141_v25 = vld [vmem:[#allocation2 + $0xd8] sm:$0xff] }
  0x89   :  { %v159_v26 = vpack.c.bf16 %v141_v25, %v140_v24 }
  0x98   :  { %268 = vmatmul.bf16.gmra.mxu0 %v152_v31 }
  0xa8   :  { %273 = vmatmul.bf16.gmra.mxu0 %v153_v38 }
  0xb5   :  { %v239_v43 = vpop.f32.mrf.mxu0 }
  0xb6   :  { %v240_v45 = vadd.f32 %v1585_v44, %v239_v43  ;;  %v1154_v43 = vld [vmem:[#allocation8 + $0x28] sm:$0xff] }
  0xb7   :  { %642 = vmatpush.bf16.msra.mxu2 %v1154_v43 }
  0xb8   :  { %278 = vmatmul.bf16.gmra.mxu0 %v154_v42  ;;  %1180 = vtanh.f32 %v240_v45 }
  0xbb   :  { %643 = vmatpush.bf16.msra.mxu2 %v1153_v48 }
  0xbd   :  { %v241_v46 = vpop.f32.mrf.mxu0 }
  0xbe   :  { %v242_v47 = vadd.f32 %v1585_v44, %v241_v46  ;;  %v1181_v51 = vpop.eup %1180 }
  0xbf   :  { %644 = vmatpush.bf16.msra.mxu2 %v1152_v49 }
  0xc0   :  { %1182 = vtanh.f32 %v242_v47 }
  0xc5   :  { %v244_v52 = vpop.f32.mrf.mxu0 }
  0xc6   :  { %v1183_v53 = vpop.eup %1182  ;;  %v245_v55 = vadd.f32 %v1585_v44, %v244_v52 }
  0xc7   :  { %v351_v54 = vpack.c.bf16 %v1183_v53, %v1181_v51  ;;  %v145_v51 = vld [vmem:[#allocation2 + $0xf8] sm:$0xff] }
  0xc8   :  { %283 = vmatmul.bf16.gmra.mxu0 %v155_v50  ;;  %1184 = vtanh.f32 %v245_v55  ;;  %v144_v50 = vld [vmem:[#allocation2 + $0xf0] sm:$0xff] }
  0xc9   :  { %443 = vmatmul.bf16.vlgmr.msra.gmra.mxu1 %v351_v54  ;;  %v161_v52 = vpack.c.bf16 %v145_v51, %v144_v50 }
  0xcd   :  { %v246_v56 = vpop.f32.mrf.mxu0 }
  0xce   :  { %v247_v57 = vadd.f32 %v1585_v44, %v246_v56  ;;  %v1185_v61 = vpop.eup %1184  ;;  %v1151_v56 = vld [vmem:[#allocation8 + $0x10] sm:$0xff] }
  0xcf   :  { %645 = vmatpush.bf16.msra.mxu2 %v1151_v56 }
  0xd0   :  { %1186 = vtanh.f32 %v247_v57 }
  0xd3   :  { %646 = vmatpush.bf16.msra.mxu2 %v1150_v58 }
  0xd5   :  { %v249_v62 = vpop.f32.mrf.mxu0 }
  0xd6   :  { %v1187_v63 = vpop.eup %1186  ;;  %v250_v1 = vadd.f32 %v1585_v44, %v249_v62  ;;  %v1149_v62 = vld [vmem:[#allocation8] sm:$0xff] }
  0xd7   :  { %v352_v0 = vpack.c.bf16 %v1187_v63, %v1185_v61  ;;  %647 = vmatpush.bf16.msra.mxu2 %v1149_v62 }
  0xd8   :  { %288 = vmatmul.bf16.gmra.mxu0 %v156_v60  ;;  %1188 = vtanh.f32 %v250_v1 }
  0xd9   :  { %448 = vmatmul.bf16.gmra.mxu1 %v352_v0 }
  0xdd   :  { %v251_v2 = vpop.f32.mrf.mxu0 }
  0xde   :  { %v252_v3 = vadd.f32 %v1585_v44, %v251_v2  ;;  %v1189_v7 = vpop.eup %1188 }
  0xe0   :  { %1190 = vtanh.f32 %v252_v3 }
  0xe5   :  { %v254_v8 = vpop.f32.mrf.mxu0 }
  0xe6   :  { %v1191_v9 = vpop.eup %1190  ;;  %v255_v11 = vadd.f32 %v1585_v44, %v254_v8 }
  0xe7   :  { %v353_v10 = vpack.c.bf16 %v1191_v9, %v1189_v7 }
  0xe8   :  { %293 = vmatmul.bf16.gmra.mxu0 %v157_v6  ;;  %1192 = vtanh.f32 %v255_v11  ;;  %v1608_v6 = vld [vmem:[%s1746_s4] ss:$0 sm:$0xff] }
  0xe9   :  { %453 = vmatmul.bf16.gmra.mxu1 %v353_v10 }
  0xed   :  { %v256_v12 = vpop.f32.mrf.mxu0 }
  0xee   :  { %v257_v13 = vadd.f32 %v1585_v44, %v256_v12  ;;  %v1193_v17 = vpop.eup %1192 }
  0xf0   :  { %1194 = vtanh.f32 %v257_v13 }
  0xf5   :  { %v259_v18 = vpop.f32.mrf.mxu0 }
  0xf6   :  { %v1195_v19 = vpop.eup %1194  ;;  %v260_v21 = vadd.f32 %v1585_v44, %v259_v18 }
  0xf7   :  { %v354_v20 = vpack.c.bf16 %v1195_v19, %v1193_v17 }
  0xf8   :  { %298 = vmatmul.bf16.gmra.mxu0 %v158_v16  ;;  %1196 = vtanh.f32 %v260_v21 }
  0xf9   :  { %458 = vmatmul.bf16.gmra.mxu1 %v354_v20 }
  0xfd   :  { %v261_v22 = vpop.f32.mrf.mxu0 }
  0xfe   :  { %v262_v23 = vadd.f32 %v1585_v44, %v261_v22  ;;  %v1197_v27 = vpop.eup %1196 }
 0x100   :  { %1198 = vtanh.f32 %v262_v23 }
 0x105   :  { %v264_v28 = vpop.f32.mrf.mxu0 }
 0x106   :  { %v1199_v29 = vpop.eup %1198  ;;  %v265_v31 = vadd.f32 %v1585_v44, %v264_v28 }
 0x107   :  { %v355_v30 = vpack.c.bf16 %v1199_v29, %v1197_v27 }
 0x108   :  { %303 = vmatmul.bf16.gmra.mxu0 %v159_v26  ;;  %1200 = vtanh.f32 %v265_v31 }
 0x109   :  { %463 = vmatmul.bf16.gmra.mxu1 %v355_v30 }
 0x10d   :  { %v266_v32 = vpop.f32.mrf.mxu0 }
 0x10e   :  { %v267_v33 = vadd.f32 %v1585_v44, %v266_v32  ;;  %v1201_v38 = vpop.eup %1200 }
 0x110   :  { %1202 = vtanh.f32 %v267_v33 }
 0x115   :  { %v269_v39 = vpop.f32.mrf.mxu0 }
 0x116   :  { %v1203_v40 = vpop.eup %1202  ;;  %v270_v45 = vadd.f32 %v1585_v44, %v269_v39 }
 0x117   :  { %v356_v42 = vpack.c.bf16 %v1203_v40, %v1201_v38 }
 0x118   :  { %308 = vmatmul.bf16.gmra.mxu0 %v160_v37  ;;  %1204 = vtanh.f32 %v270_v45 }
 0x119   :  { %468 = vmatmul.bf16.gmra.mxu1 %v356_v42 }
 0x11d   :  { %v271_v46 = vpop.f32.mrf.mxu0 }
 0x11e   :  { %v272_v47 = vadd.f32 %v1585_v44, %v271_v46  ;;  %v1205_v53 = vpop.eup %1204 }
 0x120   :  { %1206 = vtanh.f32 %v272_v47 }
 0x125   :  { %v274_v54 = vpop.f32.mrf.mxu0 }
 0x126   :  { %v1207_v55 = vpop.eup %1206  ;;  %v275_v59 = vadd.f32 %v1585_v44, %v274_v54 }
 0x127   :  { %v357_v57 = vpack.c.bf16 %v1207_v55, %v1205_v53 }
 0x128   :  { %313 = vmatmul.bf16.gmra.mxu0 %v161_v52  ;;  %1208 = vtanh.f32 %v275_v59 }
 0x129   :  { %473 = vmatmul.bf16.gmra.mxu1 %v357_v57 }
 0x12d   :  { %v276_v60 = vpop.f32.mrf.mxu0 }
 0x12e   :  { %v277_v61 = vadd.f32 %v1585_v44, %v276_v60  ;;  %v1209_v63 = vpop.eup %1208 }
 0x130   :  { %1210 = vtanh.f32 %v277_v61 }
 0x135   :  { %v279_v0 = vpop.f32.mrf.mxu0 }
 0x136   :  { %v1211_v1 = vpop.eup %1210  ;;  %v280_v3 = vadd.f32 %v1585_v44, %v279_v0 }
 0x137   :  { %v358_v2 = vpack.c.bf16 %v1211_v1, %v1209_v63 }
 0x138   :  { %1212 = vtanh.f32 %v280_v3 }
 0x139   :  { %478 = vmatmul.bf16.gmra.mxu1 %v358_v2 }
 0x13d   :  { %v281_v4 = vpop.f32.mrf.mxu0 }
 0x13e   :  { %v282_v5 = vadd.f32 %v1585_v44, %v281_v4  ;;  %v1213_v7 = vpop.eup %1212 }
 0x140   :  { %1214 = vtanh.f32 %v282_v5 }
 0x145   :  { %v284_v8 = vpop.f32.mrf.mxu0 }
 0x146   :  { %v1215_v9 = vpop.eup %1214  ;;  %v444_v10 = vpop.f32.mrf.mxu1  ;;  %v285_v13 = vadd.f32 %v1585_v44, %v284_v8 }
 0x147   :  { %v445_v11 = vadd.f32 %v1608_v6, %v444_v10  ;;  %v359_v12 = vpack.c.bf16 %v1215_v9, %v1213_v7 }
 0x148   :  { %1216 = vtanh.f32 %v285_v13 }
 0x149   :  { %524 = vst [vmem:[#allocation11] sm:$0xff] %v445_v11  ;;  %483 = vmatmul.bf16.gmra.mxu1 %v359_v12 }
 0x14d   :  { %v286_v14 = vpop.f32.mrf.mxu0 }
 0x14e   :  { %v287_v15 = vadd.f32 %v1585_v44, %v286_v14  ;;  %v446_v16 = vpop.f32.mrf.mxu1  ;;  %v1217_v19 = vpop.eup %1216 }
 0x14f   :  { %v447_v17 = vadd.f32 %v1608_v6, %v446_v16 }
 0x150   :  { %1218 = vtanh.f32 %v287_v15 }
 0x151   :  { %525 = vst [vmem:[#allocation11 + $0x8] sm:$0xff] %v447_v17  ;;  %v556_v18 = vpack.c.bf16 %v447_v17, %v445_v11 }
 0x153   :  { %648 = vmatmul.bf16.vlgmr.msra.gmra.mxu2 %v556_v18 }
 0x155   :  { %v289_v20 = vpop.f32.mrf.mxu0 }
 0x156   :  { %v1219_v21 = vpop.eup %1218  ;;  %v449_v22 = vpop.f32.mrf.mxu1  ;;  %v290_v25 = vadd.f32 %v1585_v44, %v289_v20 }
 0x157   :  { %v450_v23 = vadd.f32 %v1608_v6, %v449_v22  ;;  %v360_v24 = vpack.c.bf16 %v1219_v21, %v1217_v19 }
 0x158   :  { %1220 = vtanh.f32 %v290_v25 }
 0x159   :  { %526 = vst [vmem:[#allocation11 + $0x10] sm:$0xff] %v450_v23  ;;  %488 = vmatmul.bf16.gmra.mxu1 %v360_v24 }
 0x15d   :  { %v291_v26 = vpop.f32.mrf.mxu0 }
 0x15e   :  { %v292_v27 = vadd.f32 %v1585_v44, %v291_v26  ;;  %v451_v28 = vpop.f32.mrf.mxu1  ;;  %v1221_v31 = vpop.eup %1220  ;;  %v1163_v26 = vld [vmem:[#allocation10 + $0x30] sm:$0xff] }
 0x15f   :  { %v452_v29 = vadd.f32 %v1608_v6, %v451_v28 }
 0x160   :  { %1222 = vtanh.f32 %v292_v27 }
 0x161   :  { %527 = vst [vmem:[#allocation11 + $0x18] sm:$0xff] %v452_v29  ;;  %v557_v30 = vpack.c.bf16 %v452_v29, %v450_v23  ;;  %v1164_v23 = vld [vmem:[#allocation10 + $0x38] sm:$0xff] }
 0x162   :  { %845 = vmatpush.bf16.msra.mxu3 %v1164_v23 }
 0x163   :  { %653 = vmatmul.bf16.gmra.mxu2 %v557_v30 }
 0x165   :  { %v294_v32 = vpop.f32.mrf.mxu0 }
 0x166   :  { %v1223_v33 = vpop.eup %1222  ;;  %v454_v34 = vpop.f32.mrf.mxu1  ;;  %v295_v37 = vadd.f32 %v1585_v44, %v294_v32  ;;  %846 = vmatpush.bf16.msra.mxu3 %v1163_v26 }
 0x167   :  { %v455_v35 = vadd.f32 %v1608_v6, %v454_v34  ;;  %v361_v36 = vpack.c.bf16 %v1223_v33, %v1221_v31  ;;  %v1162_v31 = vld [vmem:[#allocation10 + $0x28] sm:$0xff]  ;;  %v1161_v33 = vld [vmem:[#allocation10 + $0x20] sm:$0xff] }
 0x168   :  { %1224 = vtanh.f32 %v295_v37 }
 0x169   :  { %528 = vst [vmem:[#allocation11 + $0x20] sm:$0xff] %v455_v35  ;;  %493 = vmatmul.bf16.gmra.mxu1 %v361_v36 }
 0x16a   :  { %847 = vmatpush.bf16.msra.mxu3 %v1162_v31 }
 0x16d   :  { %v296_v38 = vpop.f32.mrf.mxu0 }
 0x16e   :  { %v297_v39 = vadd.f32 %v1585_v44, %v296_v38  ;;  %v456_v40 = vpop.f32.mrf.mxu1  ;;  %v1225_v43 = vpop.eup %1224  ;;  %848 = vmatpush.bf16.msra.mxu3 %v1161_v33  ;;  %v1159_v38 = vld [vmem:[#allocation10 + $0x10] sm:$0xff] }
 0x16f   :  { %v457_v41 = vadd.f32 %v1608_v6, %v456_v40 }
 0x170   :  { %1226 = vtanh.f32 %v297_v39 }
 0x171   :  { %529 = vst [vmem:[#allocation11 + $0x28] sm:$0xff] %v457_v41  ;;  %v558_v42 = vpack.c.bf16 %v457_v41, %v455_v35 }
 0x173   :  { %658 = vmatmul.bf16.gmra.mxu2 %v558_v42  ;;  %v1158_v42 = vld [vmem:[#allocation10 + $0x8] sm:$0xff] }
 0x175   :  { %v299_v45 = vpop.f32.mrf.mxu0 }
 0x176   :  { %v1227_v46 = vpop.eup %1226  ;;  %v459_v47 = vpop.f32.mrf.mxu1  ;;  %v300_v50 = vadd.f32 %v1585_v44, %v299_v45 }
 0x177   :  { %v460_v48 = vadd.f32 %v1608_v6, %v459_v47  ;;  %v362_v49 = vpack.c.bf16 %v1227_v46, %v1225_v43  ;;  %v1157_v43 = vld [vmem:[#allocation10] sm:$0xff] }
 0x178   :  { %1228 = vtanh.f32 %v300_v50 }
 0x179   :  { %530 = vst [vmem:[#allocation11 + $0x30] sm:$0xff] %v460_v48  ;;  %498 = vmatmul.bf16.gmra.mxu1 %v362_v49 }
 0x17d   :  { %v301_v51 = vpop.f32.mrf.mxu0 }
 0x17e   :  { %v302_v52 = vadd.f32 %v1585_v44, %v301_v51  ;;  %v461_v53 = vpop.f32.mrf.mxu1  ;;  %v1229_v56 = vpop.eup %1228 }
 0x17f   :  { %v462_v54 = vadd.f32 %v1608_v6, %v461_v53  ;;  %v1646_v53 = vld [vmem:[%s1748_s6] ss:$0 sm:$0xff] }
 0x180   :  { %1230 = vtanh.f32 %v302_v52 }
 0x181   :  { %531 = vst [vmem:[#allocation11 + $0x38] sm:$0xff] %v462_v54  ;;  %v559_v55 = vpack.c.bf16 %v462_v54, %v460_v48 }
 0x183   :  { %663 = vmatmul.bf16.gmra.mxu2 %v559_v55 }
 0x185   :  { %v304_v57 = vpop.f32.mrf.mxu0 }
 0x186   :  { %v1231_v58 = vpop.eup %1230  ;;  %v464_v59 = vpop.f32.mrf.mxu1  ;;  %v305_v62 = vadd.f32 %v1585_v44, %v304_v57 }
 0x187   :  { %v465_v60 = vadd.f32 %v1608_v6, %v464_v59  ;;  %v363_v61 = vpack.c.bf16 %v1231_v58, %v1229_v56 }
 0x188   :  { %1232 = vtanh.f32 %v305_v62 }
 0x189   :  { %532 = vst [vmem:[#allocation11 + $0x40] sm:$0xff] %v465_v60  ;;  %503 = vmatmul.bf16.gmra.mxu1 %v363_v61 }
 0x18d   :  { %v306_v63 = vpop.f32.mrf.mxu0 }
 0x18e   :  { %v307_v0 = vadd.f32 %v1585_v44, %v306_v63  ;;  %v466_v1 = vpop.f32.mrf.mxu1  ;;  %v1233_v4 = vpop.eup %1232 }
 0x18f   :  { %v467_v2 = vadd.f32 %v1608_v6, %v466_v1 }
 0x190   :  { %1234 = vtanh.f32 %v307_v0 }
 0x191   :  { %533 = vst [vmem:[#allocation11 + $0x48] sm:$0xff] %v467_v2  ;;  %v560_v3 = vpack.c.bf16 %v467_v2, %v465_v60 }
 0x193   :  { %668 = vmatmul.bf16.gmra.mxu2 %v560_v3 }
 0x195   :  { %v309_v5 = vpop.f32.mrf.mxu0 }
 0x196   :  { %v1235_v7 = vpop.eup %1234  ;;  %v469_v8 = vpop.f32.mrf.mxu1  ;;  %v310_v11 = vadd.f32 %v1585_v44, %v309_v5 }
 0x197   :  { %v470_v9 = vadd.f32 %v1608_v6, %v469_v8  ;;  %v364_v10 = vpack.c.bf16 %v1235_v7, %v1233_v4 }
 0x198   :  { %1236 = vtanh.f32 %v310_v11 }
 0x199   :  { %534 = vst [vmem:[#allocation11 + $0x50] sm:$0xff] %v470_v9  ;;  %508 = vmatmul.bf16.gmra.mxu1 %v364_v10 }
 0x19d   :  { %v311_v12 = vpop.f32.mrf.mxu0 }
 0x19e   :  { %v312_v13 = vadd.f32 %v1585_v44, %v311_v12  ;;  %v471_v14 = vpop.f32.mrf.mxu1  ;;  %v1237_v17 = vpop.eup %1236 }
 0x19f   :  { %v472_v15 = vadd.f32 %v1608_v6, %v471_v14 }
 0x1a0   :  { %1238 = vtanh.f32 %v312_v13 }
 0x1a1   :  { %535 = vst [vmem:[#allocation11 + $0x58] sm:$0xff] %v472_v15  ;;  %v561_v16 = vpack.c.bf16 %v472_v15, %v470_v9 }
 0x1a3   :  { %673 = vmatmul.bf16.gmra.mxu2 %v561_v16 }
 0x1a5   :  { %v314_v18 = vpop.f32.mrf.mxu0 }
 0x1a6   :  { %v1239_v19 = vpop.eup %1238  ;;  %v474_v20 = vpop.f32.mrf.mxu1  ;;  %v315_v24 = vadd.f32 %v1585_v44, %v314_v18 }
 0x1a7   :  { %v475_v21 = vadd.f32 %v1608_v6, %v474_v20  ;;  %v365_v22 = vpack.c.bf16 %v1239_v19, %v1237_v17 }
 0x1a8   :  { %1240 = vtanh.f32 %v315_v24 }
 0x1a9   :  { %536 = vst [vmem:[#allocation11 + $0x60] sm:$0xff] %v475_v21  ;;  %513 = vmatmul.bf16.gmra.mxu1 %v365_v22 }
 0x1ad   :  { %v316_v25 = vpop.f32.mrf.mxu0 }
 0x1ae   :  { %v317_v27 = vadd.f32 %v1585_v44, %v316_v25  ;;  %v476_v28 = vpop.f32.mrf.mxu1  ;;  %v1241_v32 = vpop.eup %1240  ;;  %v1160_v44 = vld [vmem:[#allocation10 + $0x18] sm:$0xff] }
 0x1af   :  { %v477_v29 = vadd.f32 %v1608_v6, %v476_v28  ;;  %849 = vmatpush.bf16.msra.mxu3 %v1160_v44 }
 0x1b0   :  { %1242 = vtanh.f32 %v317_v27 }
 0x1b1   :  { %537 = vst [vmem:[#allocation11 + $0x68] sm:$0xff] %v477_v29  ;;  %v562_v30 = vpack.c.bf16 %v477_v29, %v475_v21 }
 0x1b3   :  { %678 = vmatmul.bf16.gmra.mxu2 %v562_v30  ;;  %850 = vmatpush.bf16.msra.mxu3 %v1159_v38 }
 0x1b6   :  { %v1243_v34 = vpop.eup %1242  ;;  %v479_v35 = vpop.f32.mrf.mxu1 }
 0x1b7   :  { %v480_v36 = vadd.f32 %v1608_v6, %v479_v35  ;;  %v366_v37 = vpack.c.bf16 %v1243_v34, %v1241_v32  ;;  %851 = vmatpush.bf16.msra.mxu3 %v1158_v42 }
 0x1b9   :  { %538 = vst [vmem:[#allocation11 + $0x70] sm:$0xff] %v480_v36  ;;  %518 = vmatmul.bf16.gmra.mxu1 %v366_v37 }
 0x1bb   :  { %852 = vmatpush.bf16.msra.mxu3 %v1157_v43 }
 0x1be   :  { %v481_v39 = vpop.f32.mrf.mxu1 }
 0x1bf   :  { %v482_v40 = vadd.f32 %v1608_v6, %v481_v39 }
 0x1c1   :  { %539 = vst [vmem:[#allocation11 + $0x78] sm:$0xff] %v482_v40  ;;  %v563_v41 = vpack.c.bf16 %v482_v40, %v480_v36 }
 0x1c3   :  { %683 = vmatmul.bf16.gmra.mxu2 %v563_v41 }
 0x1c6   :  { %v484_v45 = vpop.f32.mrf.mxu1 }
 0x1c7   :  { %v485_v46 = vadd.f32 %v1608_v6, %v484_v45 }
 0x1c9   :  { %540 = vst [vmem:[#allocation11 + $0x80] sm:$0xff] %v485_v46 }
 0x1ce   :  { %v486_v47 = vpop.f32.mrf.mxu1 }
 0x1cf   :  { %v487_v48 = vadd.f32 %v1608_v6, %v486_v47 }
 0x1d1   :  { %541 = vst [vmem:[#allocation11 + $0x88] sm:$0xff] %v487_v48  ;;  %v564_v49 = vpack.c.bf16 %v487_v48, %v485_v46 }
 0x1d3   :  { %688 = vmatmul.bf16.gmra.mxu2 %v564_v49 }
 0x1d6   :  { %v489_v50 = vpop.f32.mrf.mxu1  ;;  %v649_v51 = vpop.f32.mrf.mxu2 }
 0x1d7   :  { %v490_v52 = vadd.f32 %v1608_v6, %v489_v50  ;;  %v650_v54 = vadd.f32 %v1646_v53, %v649_v51 }
 0x1d9   :  { %542 = vst [vmem:[#allocation11 + $0x90] sm:$0xff] %v490_v52  ;;  %1244 = vtanh.f32 %v650_v54 }
 0x1de   :  { %v491_v55 = vpop.f32.mrf.mxu1  ;;  %v651_v56 = vpop.f32.mrf.mxu2 }
 0x1df   :  { %v492_v57 = vadd.f32 %v1608_v6, %v491_v55  ;;  %v652_v58 = vadd.f32 %v1646_v53, %v651_v56  ;;  %v1245_v60 = vpop.eup %1244 }
 0x1e1   :  { %543 = vst [vmem:[#allocation11 + $0x98] sm:$0xff] %v492_v57  ;;  %1246 = vtanh.f32 %v652_v58  ;;  %v565_v59 = vpack.c.bf16 %v492_v57, %v490_v52 }
 0x1e3   :  { %693 = vmatmul.bf16.gmra.mxu2 %v565_v59 }
 0x1e6   :  { %v494_v61 = vpop.f32.mrf.mxu1  ;;  %v654_v62 = vpop.f32.mrf.mxu2 }
 0x1e7   :  { %v1247_v63 = vpop.eup %1246  ;;  %v495_v0 = vadd.f32 %v1608_v6, %v494_v61  ;;  %v655_v2 = vadd.f32 %v1646_v53, %v654_v62 }
 0x1e8   :  { %v761_v1 = vpack.c.bf16 %v1247_v63, %v1245_v60 }
 0x1e9   :  { %544 = vst [vmem:[#allocation11 + $0xa0] sm:$0xff] %v495_v0  ;;  %1248 = vtanh.f32 %v655_v2 }
 0x1ea   :  { %853 = vmatmul.bf16.vlgmr.msra.gmra.mxu3 %v761_v1 }
 0x1ee   :  { %v496_v3 = vpop.f32.mrf.mxu1  ;;  %v656_v4 = vpop.f32.mrf.mxu2 }
 0x1ef   :  { %v497_v5 = vadd.f32 %v1608_v6, %v496_v3  ;;  %v657_v7 = vadd.f32 %v1646_v53, %v656_v4  ;;  %v1249_v9 = vpop.eup %1248 }
 0x1f1   :  { %545 = vst [vmem:[#allocation11 + $0xa8] sm:$0xff] %v497_v5  ;;  %1250 = vtanh.f32 %v657_v7  ;;  %v566_v8 = vpack.c.bf16 %v497_v5, %v495_v0 }
 0x1f3   :  { %698 = vmatmul.bf16.gmra.mxu2 %v566_v8 }
 0x1f6   :  { %v499_v10 = vpop.f32.mrf.mxu1  ;;  %v659_v11 = vpop.f32.mrf.mxu2 }
 0x1f7   :  { %v1251_v12 = vpop.eup %1250  ;;  %v500_v13 = vadd.f32 %v1608_v6, %v499_v10  ;;  %v660_v15 = vadd.f32 %v1646_v53, %v659_v11 }
 0x1f8   :  { %v762_v14 = vpack.c.bf16 %v1251_v12, %v1249_v9 }
 0x1f9   :  { %546 = vst [vmem:[#allocation11 + $0xb0] sm:$0xff] %v500_v13  ;;  %1252 = vtanh.f32 %v660_v15 }
 0x1fa   :  { %858 = vmatmul.bf16.gmra.mxu3 %v762_v14 }
 0x1fe   :  { %v501_v16 = vpop.f32.mrf.mxu1  ;;  %v661_v17 = vpop.f32.mrf.mxu2 }
 0x1ff   :  { %v502_v18 = vadd.f32 %v1608_v6, %v501_v16  ;;  %v662_v19 = vadd.f32 %v1646_v53, %v661_v17  ;;  %v1253_v21 = vpop.eup %1252 }
 0x201   :  { %547 = vst [vmem:[#allocation11 + $0xb8] sm:$0xff] %v502_v18  ;;  %1254 = vtanh.f32 %v662_v19  ;;  %v567_v20 = vpack.c.bf16 %v502_v18, %v500_v13 }
 0x203   :  { %703 = vmatmul.bf16.gmra.mxu2 %v567_v20 }
 0x206   :  { %v504_v22 = vpop.f32.mrf.mxu1  ;;  %v664_v23 = vpop.f32.mrf.mxu2 }
 0x207   :  { %v1255_v24 = vpop.eup %1254  ;;  %v505_v25 = vadd.f32 %v1608_v6, %v504_v22  ;;  %v665_v27 = vadd.f32 %v1646_v53, %v664_v23 }
 0x208   :  { %v763_v26 = vpack.c.bf16 %v1255_v24, %v1253_v21  ;;  %v1682_v24 = vld [vmem:[%s1750_s8] ss:$0 sm:$0xff]  ;;  %s1495_s8 = smov [#allocation11]  }
 0x209   :  { %548 = vst [vmem:[#allocation11 + $0xc0] sm:$0xff] %v505_v25  ;;  %1256 = vtanh.f32 %v665_v27  ;;  %s970_s22 = sshll.u32 %s1495_s8, 4  ;;  %s971_s22 = int_to_ptr.vmem [resolvable:$true] %s970_s22 }
 0x20a   :  { %863 = vmatmul.bf16.gmra.mxu3 %v763_v26 }
 0x20e   :  { %v506_v28 = vpop.f32.mrf.mxu1  ;;  %v666_v29 = vpop.f32.mrf.mxu2 }
 0x20f   :  { %v507_v30 = vadd.f32 %v1608_v6, %v506_v28  ;;  %v667_v31 = vadd.f32 %v1646_v53, %v666_v29  ;;  %v1257_v33 = vpop.eup %1256 }
 0x211   :  { %549 = vst [vmem:[#allocation11 + $0xc8] sm:$0xff] %v507_v30  ;;  %v568_v32 = vpack.c.bf16 %v507_v30, %v505_v25  ;;  %1258 = vtanh.f32 %v667_v31 }
 0x213   :  { %708 = vmatmul.bf16.gmra.mxu2 %v568_v32 }
 0x216   :  { %v509_v34 = vpop.f32.mrf.mxu1  ;;  %v669_v35 = vpop.f32.mrf.mxu2 }
 0x217   :  { %v1259_v36 = vpop.eup %1258  ;;  %v510_v37 = vadd.f32 %v1608_v6, %v509_v34  ;;  %v670_v38 = vadd.f32 %v1646_v53, %v669_v35 }
 0x218   :  { %v764_v44 = vpack.c.bf16 %v1259_v36, %v1257_v33 }
 0x219   :  { %550 = vst [vmem:[#allocation11 + $0xd0] sm:$0xff] %v510_v37  ;;  %1260 = vtanh.f32 %v670_v38 }
 0x21a   :  { %868 = vmatmul.bf16.gmra.mxu3 %v764_v44 }
 0x21e   :  { %v511_v39 = vpop.f32.mrf.mxu1  ;;  %v671_v40 = vpop.f32.mrf.mxu2 }
 0x21f   :  { %v512_v41 = vadd.f32 %v1608_v6, %v511_v39  ;;  %v672_v42 = vadd.f32 %v1646_v53, %v671_v40  ;;  %v1261_v45 = vpop.eup %1260 }
 0x221   :  { %551 = vst [vmem:[#allocation11 + $0xd8] sm:$0xff] %v512_v41  ;;  %v569_v43 = vpack.c.bf16 %v512_v41, %v510_v37  ;;  %1262 = vtanh.f32 %v672_v42 }
 0x223   :  { %713 = vmatmul.bf16.gmra.mxu2 %v569_v43 }
 0x226   :  { %v514_v46 = vpop.f32.mrf.mxu1  ;;  %v674_v47 = vpop.f32.mrf.mxu2 }
 0x227   :  { %v1263_v48 = vpop.eup %1262  ;;  %v515_v49 = vadd.f32 %v1608_v6, %v514_v46  ;;  %v675_v51 = vadd.f32 %v1646_v53, %v674_v47 }
 0x228   :  { %v765_v50 = vpack.c.bf16 %v1263_v48, %v1261_v45 }
 0x229   :  { %552 = vst [vmem:[#allocation11 + $0xe0] sm:$0xff] %v515_v49  ;;  %1264 = vtanh.f32 %v675_v51 }
 0x22a   :  { %873 = vmatmul.bf16.gmra.mxu3 %v765_v50 }
 0x22e   :  { %v516_v52 = vpop.f32.mrf.mxu1  ;;  %v676_v54 = vpop.f32.mrf.mxu2 }
 0x22f   :  { %v517_v55 = vadd.f32 %v1608_v6, %v516_v52  ;;  %v677_v56 = vadd.f32 %v1646_v53, %v676_v54  ;;  %v1265_v58 = vpop.eup %1264 }
 0x231   :  { %553 = vst [vmem:[#allocation11 + $0xe8] sm:$0xff] %v517_v55  ;;  %v570_v57 = vpack.c.bf16 %v517_v55, %v515_v49  ;;  %1266 = vtanh.f32 %v677_v56 }
 0x233   :  { %718 = vmatmul.bf16.gmra.mxu2 %v570_v57 }
 0x236   :  { %v519_v59 = vpop.f32.mrf.mxu1  ;;  %v679_v60 = vpop.f32.mrf.mxu2 }
 0x237   :  { %v1267_v61 = vpop.eup %1266  ;;  %v520_v62 = vadd.f32 %v1608_v6, %v519_v59  ;;  %v680_v0 = vadd.f32 %v1646_v53, %v679_v60 }
 0x238   :  { %v766_v63 = vpack.c.bf16 %v1267_v61, %v1265_v58 }
 0x239   :  { %554 = vst [vmem:[#allocation11 + $0xf0] sm:$0xff] %v520_v62  ;;  %1268 = vtanh.f32 %v680_v0 }
 0x23a   :  { %878 = vmatmul.bf16.gmra.mxu3 %v766_v63 }
 0x23e   :  { %v521_v1 = vpop.f32.mrf.mxu1  ;;  %v681_v2 = vpop.f32.mrf.mxu2 }
 0x23f   :  { %v522_v3 = vadd.f32 %v1608_v6, %v521_v1  ;;  %v682_v4 = vadd.f32 %v1646_v53, %v681_v2  ;;  %v1269_v7 = vpop.eup %1268 }
 0x241   :  { %555 = vst [vmem:[#allocation11 + $0xf8] sm:$0xff] %v522_v3  ;;  %v571_v5 = vpack.c.bf16 %v522_v3, %v520_v62  ;;  %1270 = vtanh.f32 %v682_v4 }
 0x242   :  { %978 = dma.vmem_to_hbm [thread:$0]  %s971_s22, 4096, %s973_s25, [#allocation4], %s1491_s11, %s1491_s11, %s1492_s12  }
 0x243   :  { %723 = vmatmul.bf16.gmra.mxu2 %v571_v5 }
 0x246   :  { %v684_v8 = vpop.f32.mrf.mxu2 }
 0x247   :  { %v1271_v9 = vpop.eup %1270  ;;  %v685_v11 = vadd.f32 %v1646_v53, %v684_v8 }
 0x248   :  { %v767_v10 = vpack.c.bf16 %v1271_v9, %v1269_v7 }
 0x249   :  { %1272 = vtanh.f32 %v685_v11 }
 0x24a   :  { %883 = vmatmul.bf16.gmra.mxu3 %v767_v10 }
 0x24e   :  { %v686_v12 = vpop.f32.mrf.mxu2 }
 0x24f   :  { %v687_v13 = vadd.f32 %v1646_v53, %v686_v12  ;;  %v1273_v6 = vpop.eup %1272 }
 0x251   :  { %1274 = vtanh.f32 %v687_v13 }
 0x256   :  { %v689_v14 = vpop.f32.mrf.mxu2 }
 0x257   :  { %v1275_v15 = vpop.eup %1274  ;;  %v690_v17 = vadd.f32 %v1646_v53, %v689_v14 }
 0x258   :  { %v768_v16 = vpack.c.bf16 %v1275_v15, %v1273_v6 }
 0x259   :  { %1276 = vtanh.f32 %v690_v17 }
 0x25a   :  { %888 = vmatmul.bf16.gmra.mxu3 %v768_v16 }
 0x25e   :  { %v691_v18 = vpop.f32.mrf.mxu2 }
 0x25f   :  { %v692_v19 = vadd.f32 %v1646_v53, %v691_v18  ;;  %v1277_v20 = vpop.eup %1276 }
 0x261   :  { %1278 = vtanh.f32 %v692_v19 }
 0x266   :  { %v694_v21 = vpop.f32.mrf.mxu2 }
 0x267   :  { %v1279_v22 = vpop.eup %1278  ;;  %v695_v25 = vadd.f32 %v1646_v53, %v694_v21 }
 0x268   :  { %v769_v23 = vpack.c.bf16 %v1279_v22, %v1277_v20 }
 0x269   :  { %1280 = vtanh.f32 %v695_v25 }
 0x26a   :  { %893 = vmatmul.bf16.gmra.mxu3 %v769_v23 }
 0x26d   :  { %v854_v26 = vpop.f32.mrf.mxu3 }
 0x26e   :  { %v855_v27 = vadd.f32 %v1682_v24, %v854_v26  ;;  %v696_v28 = vpop.f32.mrf.mxu2 }
 0x26f   :  { %v697_v29 = vadd.f32 %v1646_v53, %v696_v28  ;;  %v1281_v31 = vpop.eup %1280 }
 0x270   :  { %934 = vst [vmem:[#allocation12] sm:$0xff] %v855_v27 }
 0x271   :  { %1282 = vtanh.f32 %v697_v29 }
 0x275   :  { %v856_v30 = vpop.f32.mrf.mxu3 }
 0x276   :  { %v857_v32 = vadd.f32 %v1682_v24, %v856_v30  ;;  %v699_v33 = vpop.f32.mrf.mxu2 }
 0x277   :  { %v1283_v34 = vpop.eup %1282  ;;  %v700_v36 = vadd.f32 %v1646_v53, %v699_v33 }
 0x278   :  { %935 = vst [vmem:[#allocation12 + $0x8] sm:$0xff] %v857_v32  ;;  %v770_v35 = vpack.c.bf16 %v1283_v34, %v1281_v31 }
 0x279   :  { %1284 = vtanh.f32 %v700_v36 }
 0x27a   :  { %898 = vmatmul.bf16.gmra.mxu3 %v770_v35 }
 0x27d   :  { %v859_v37 = vpop.f32.mrf.mxu3 }
 0x27e   :  { %v860_v44 = vadd.f32 %v1682_v24, %v859_v37  ;;  %v701_v38 = vpop.f32.mrf.mxu2 }
 0x27f   :  { %v702_v39 = vadd.f32 %v1646_v53, %v701_v38  ;;  %v1285_v41 = vpop.eup %1284 }
 0x280   :  { %936 = vst [vmem:[#allocation12 + $0x10] sm:$0xff] %v860_v44 }
 0x281   :  { %1286 = vtanh.f32 %v702_v39 }
 0x285   :  { %v861_v40 = vpop.f32.mrf.mxu3 }
 0x286   :  { %v862_v42 = vadd.f32 %v1682_v24, %v861_v40  ;;  %v704_v43 = vpop.f32.mrf.mxu2 }
 0x287   :  { %v1287_v45 = vpop.eup %1286  ;;  %v705_v47 = vadd.f32 %v1646_v53, %v704_v43 }
 0x288   :  { %937 = vst [vmem:[#allocation12 + $0x18] sm:$0xff] %v862_v42  ;;  %v771_v46 = vpack.c.bf16 %v1287_v45, %v1285_v41 }
 0x289   :  { %1288 = vtanh.f32 %v705_v47 }
 0x28a   :  { %903 = vmatmul.bf16.gmra.mxu3 %v771_v46 }
 0x28d   :  { %v864_v48 = vpop.f32.mrf.mxu3 }
 0x28e   :  { %v865_v49 = vadd.f32 %v1682_v24, %v864_v48  ;;  %v706_v50 = vpop.f32.mrf.mxu2 }
 0x28f   :  { %v707_v51 = vadd.f32 %v1646_v53, %v706_v50  ;;  %v1289_v54 = vpop.eup %1288 }
 0x290   :  { %938 = vst [vmem:[#allocation12 + $0x20] sm:$0xff] %v865_v49 }
 0x291   :  { %1290 = vtanh.f32 %v707_v51 }
 0x295   :  { %v866_v52 = vpop.f32.mrf.mxu3 }
 0x296   :  { %v867_v55 = vadd.f32 %v1682_v24, %v866_v52  ;;  %v709_v56 = vpop.f32.mrf.mxu2 }
 0x297   :  { %v1291_v57 = vpop.eup %1290  ;;  %v710_v59 = vadd.f32 %v1646_v53, %v709_v56 }
 0x298   :  { %939 = vst [vmem:[#allocation12 + $0x28] sm:$0xff] %v867_v55  ;;  %v772_v58 = vpack.c.bf16 %v1291_v57, %v1289_v54 }
 0x299   :  { %1292 = vtanh.f32 %v710_v59 }
 0x29a   :  { %908 = vmatmul.bf16.gmra.mxu3 %v772_v58 }
 0x29d   :  { %v869_v60 = vpop.f32.mrf.mxu3 }
 0x29e   :  { %v870_v61 = vadd.f32 %v1682_v24, %v869_v60  ;;  %v711_v62 = vpop.f32.mrf.mxu2 }
 0x29f   :  { %v712_v63 = vadd.f32 %v1646_v53, %v711_v62  ;;  %v1293_v1 = vpop.eup %1292 }
 0x2a0   :  { %940 = vst [vmem:[#allocation12 + $0x30] sm:$0xff] %v870_v61 }
 0x2a1   :  { %1294 = vtanh.f32 %v712_v63 }
 0x2a5   :  { %v871_v0 = vpop.f32.mrf.mxu3 }
 0x2a6   :  { %v872_v2 = vadd.f32 %v1682_v24, %v871_v0  ;;  %v714_v3 = vpop.f32.mrf.mxu2 }
 0x2a7   :  { %v1295_v4 = vpop.eup %1294  ;;  %v715_v7 = vadd.f32 %v1646_v53, %v714_v3 }
 0x2a8   :  { %941 = vst [vmem:[#allocation12 + $0x38] sm:$0xff] %v872_v2  ;;  %v773_v5 = vpack.c.bf16 %v1295_v4, %v1293_v1 }
 0x2a9   :  { %1296 = vtanh.f32 %v715_v7 }
 0x2aa   :  { %913 = vmatmul.bf16.gmra.mxu3 %v773_v5 }
 0x2ad   :  { %v874_v8 = vpop.f32.mrf.mxu3 }
 0x2ae   :  { %v875_v9 = vadd.f32 %v1682_v24, %v874_v8  ;;  %v716_v10 = vpop.f32.mrf.mxu2 }
 0x2af   :  { %v717_v11 = vadd.f32 %v1646_v53, %v716_v10  ;;  %v1297_v13 = vpop.eup %1296 }
 0x2b0   :  { %942 = vst [vmem:[#allocation12 + $0x40] sm:$0xff] %v875_v9 }
 0x2b1   :  { %1298 = vtanh.f32 %v717_v11 }
 0x2b5   :  { %v876_v12 = vpop.f32.mrf.mxu3 }
 0x2b6   :  { %v877_v6 = vadd.f32 %v1682_v24, %v876_v12  ;;  %v719_v14 = vpop.f32.mrf.mxu2 }
 0x2b7   :  { %v1299_v15 = vpop.eup %1298  ;;  %v720_v17 = vadd.f32 %v1646_v53, %v719_v14 }
 0x2b8   :  { %943 = vst [vmem:[#allocation12 + $0x48] sm:$0xff] %v877_v6  ;;  %v774_v16 = vpack.c.bf16 %v1299_v15, %v1297_v13 }
 0x2b9   :  { %1300 = vtanh.f32 %v720_v17 }
 0x2ba   :  { %918 = vmatmul.bf16.gmra.mxu3 %v774_v16 }
 0x2bd   :  { %v879_v18 = vpop.f32.mrf.mxu3 }
 0x2be   :  { %v880_v19 = vadd.f32 %v1682_v24, %v879_v18  ;;  %v721_v20 = vpop.f32.mrf.mxu2 }
 0x2bf   :  { %v722_v21 = vadd.f32 %v1646_v53, %v721_v20  ;;  %v1301_v23 = vpop.eup %1300 }
 0x2c0   :  { %944 = vst [vmem:[#allocation12 + $0x50] sm:$0xff] %v880_v19 }
 0x2c1   :  { %1302 = vtanh.f32 %v722_v21 }
 0x2c5   :  { %v881_v22 = vpop.f32.mrf.mxu3 }
 0x2c6   :  { %v882_v25 = vadd.f32 %v1682_v24, %v881_v22  ;;  %v724_v26 = vpop.f32.mrf.mxu2 }
 0x2c7   :  { %v1303_v27 = vpop.eup %1302  ;;  %v725_v29 = vadd.f32 %v1646_v53, %v724_v26 }
 0x2c8   :  { %945 = vst [vmem:[#allocation12 + $0x58] sm:$0xff] %v882_v25  ;;  %v775_v28 = vpack.c.bf16 %v1303_v27, %v1301_v23 }
 0x2c9   :  { %1304 = vtanh.f32 %v725_v29 }
 0x2ca   :  { %923 = vmatmul.bf16.gmra.mxu3 %v775_v28 }
 0x2cd   :  { %v884_v30 = vpop.f32.mrf.mxu3 }
 0x2ce   :  { %v885_v31 = vadd.f32 %v1682_v24, %v884_v30  ;;  %v726_v32 = vpop.f32.mrf.mxu2 }
 0x2cf   :  { %v727_v33 = vadd.f32 %v1646_v53, %v726_v32  ;;  %v1305_v35 = vpop.eup %1304 }
 0x2d0   :  { %946 = vst [vmem:[#allocation12 + $0x60] sm:$0xff] %v885_v31 }
 0x2d1   :  { %1306 = vtanh.f32 %v727_v33 }
 0x2d5   :  { %v886_v34 = vpop.f32.mrf.mxu3 }
 0x2d6   :  { %v887_v36 = vadd.f32 %v1682_v24, %v886_v34 }
 0x2d7   :  { %v1307_v37 = vpop.eup %1306 }
 0x2d8   :  { %947 = vst [vmem:[#allocation12 + $0x68] sm:$0xff] %v887_v36  ;;  %v776_v44 = vpack.c.bf16 %v1307_v37, %v1305_v35 }
 0x2da   :  { %928 = vmatmul.bf16.gmra.mxu3 %v776_v44 }
 0x2dd   :  { %v889_v38 = vpop.f32.mrf.mxu3 }
 0x2de   :  { %v890_v39 = vadd.f32 %v1682_v24, %v889_v38 }
 0x2e0   :  { %948 = vst [vmem:[#allocation12 + $0x70] sm:$0xff] %v890_v39 }
 0x2e5   :  { %v891_v40 = vpop.f32.mrf.mxu3 }
 0x2e6   :  { %v892_v41 = vadd.f32 %v1682_v24, %v891_v40 }
 0x2e8   :  { %949 = vst [vmem:[#allocation12 + $0x78] sm:$0xff] %v892_v41 }
 0x2ed   :  { %v894_v53 = vpop.f32.mrf.mxu3 }
 0x2ee   :  { %v895_v42 = vadd.f32 %v1682_v24, %v894_v53 }
 0x2f0   :  { %950 = vst [vmem:[#allocation12 + $0x80] sm:$0xff] %v895_v42 }
 0x2f5   :  { %v896_v43 = vpop.f32.mrf.mxu3 }
 0x2f6   :  { %v897_v45 = vadd.f32 %v1682_v24, %v896_v43 }
 0x2f8   :  { %951 = vst [vmem:[#allocation12 + $0x88] sm:$0xff] %v897_v45 }
 0x2fd   :  { %v899_v46 = vpop.f32.mrf.mxu3 }
 0x2fe   :  { %v900_v47 = vadd.f32 %v1682_v24, %v899_v46 }
 0x300   :  { %952 = vst [vmem:[#allocation12 + $0x90] sm:$0xff] %v900_v47 }
 0x305   :  { %v901_v48 = vpop.f32.mrf.mxu3 }
 0x306   :  { %v902_v49 = vadd.f32 %v1682_v24, %v901_v48 }
 0x308   :  { %953 = vst [vmem:[#allocation12 + $0x98] sm:$0xff] %v902_v49 }
 0x30d   :  { %v904_v50 = vpop.f32.mrf.mxu3 }
 0x30e   :  { %v905_v51 = vadd.f32 %v1682_v24, %v904_v50 }
 0x310   :  { %954 = vst [vmem:[#allocation12 + $0xa0] sm:$0xff] %v905_v51 }
 0x315   :  { %v906_v52 = vpop.f32.mrf.mxu3 }
 0x316   :  { %v907_v54 = vadd.f32 %v1682_v24, %v906_v52 }
 0x318   :  { %955 = vst [vmem:[#allocation12 + $0xa8] sm:$0xff] %v907_v54 }
 0x31d   :  { %v909_v55 = vpop.f32.mrf.mxu3 }
 0x31e   :  { %v910_v56 = vadd.f32 %v1682_v24, %v909_v55 }
 0x320   :  { %956 = vst [vmem:[#allocation12 + $0xb0] sm:$0xff] %v910_v56 }
 0x325   :  { %v911_v57 = vpop.f32.mrf.mxu3 }
 0x326   :  { %v912_v58 = vadd.f32 %v1682_v24, %v911_v57 }
 0x328   :  { %957 = vst [vmem:[#allocation12 + $0xb8] sm:$0xff] %v912_v58 }
 0x32d   :  { %v914_v59 = vpop.f32.mrf.mxu3 }
 0x32e   :  { %v915_v60 = vadd.f32 %v1682_v24, %v914_v59 }
 0x330   :  { %958 = vst [vmem:[#allocation12 + $0xc0] sm:$0xff] %v915_v60 }
 0x335   :  { %v916_v61 = vpop.f32.mrf.mxu3 }
 0x336   :  { %v917_v62 = vadd.f32 %v1682_v24, %v916_v61 }
 0x338   :  { %959 = vst [vmem:[#allocation12 + $0xc8] sm:$0xff] %v917_v62 }
 0x33d   :  { %v919_v63 = vpop.f32.mrf.mxu3 }
 0x33e   :  { %v920_v0 = vadd.f32 %v1682_v24, %v919_v63 }
 0x340   :  { %960 = vst [vmem:[#allocation12 + $0xd0] sm:$0xff] %v920_v0 }
 0x345   :  { %v921_v1 = vpop.f32.mrf.mxu3 }
 0x346   :  { %v922_v2 = vadd.f32 %v1682_v24, %v921_v1 }
 0x348   :  { %961 = vst [vmem:[#allocation12 + $0xd8] sm:$0xff] %v922_v2 }
 0x34d   :  { %v924_v3 = vpop.f32.mrf.mxu3 }
 0x34e   :  { %v925_v4 = vadd.f32 %v1682_v24, %v924_v3 }
 0x350   :  { %962 = vst [vmem:[#allocation12 + $0xe0] sm:$0xff] %v925_v4 }
 0x355   :  { %v926_v5 = vpop.f32.mrf.mxu3 }
 0x356   :  { %v927_v7 = vadd.f32 %v1682_v24, %v926_v5 }
 0x358   :  { %963 = vst [vmem:[#allocation12 + $0xe8] sm:$0xff] %v927_v7 }
 0x35d   :  { %v929_v8 = vpop.f32.mrf.mxu3 }
 0x35e   :  { %v930_v9 = vadd.f32 %v1682_v24, %v929_v8 }
 0x360   :  { %964 = vst [vmem:[#allocation12 + $0xf0] sm:$0xff] %v930_v9 }
 0x365   :  { %v931_v10 = vpop.f32.mrf.mxu3 }
 0x366   :  { %v932_v11 = vadd.f32 %v1682_v24, %v931_v10 }
 0x368   :  { %965 = vst [vmem:[#allocation12 + $0xf8] sm:$0xff] %v932_v11 }
 0x369   :  { %991 = dma.vmem_to_hbm [thread:$0]  %s984_s1, 4096, %s986_s27, [#allocation13], %s1491_s11, %s1491_s11, %s1492_s12  }
 0x36a   :  { %1482 = dma.done.wait [#allocation4], 4096  }
 0x36b   :  { %1483 = vsyncadd [#allocation4], 4294963200 }
 0x36c   :  { %1484 = dma.done.wait [#allocation13], 4096  }
 0x36d   :  { %1485 = vsyncadd [#allocation13], 4294963200 }
 0x36e   :  { %1000 = vsyncpa [#allocation3], 1 }
 0x36f   :  { %1001 = vsyncpa [#allocation6], 1 }
 0x370   :  { %1002 = vsyncpa [#allocation9], 1 }
 0x371   :  { %1003 = vsyncpa [#allocation4], 1 }
 0x372   :  { %1004 = vsyncpa [#allocation13], 1 }

</bundles_post_ra>
